<compile_context>
chip_gen: v7x
topology: tpu7x:2x2x1
jax: 0.10.0
libtpu: 0.0.40
codegen_flags: <defaults>
</compile_context>

<pallas_src>
import functools

import jax
import jax.numpy as jnp
from jax import lax
from jax.experimental import pallas as pl
from jax.experimental.pallas import tpu as pltpu


def _round_up(n, m):
    return ((n + m - 1) // m) * m


_ALIGN = 16  # bf16 sublane tile height; keeps every slab section tile-aligned.


def _layout(input_size, hidden_size, num_layer, num_class):
    """Static row/col layout of the single packed parameter slab."""
    H = hidden_size
    G = 4 * H
    nc_pad = _round_up(num_class, 128)
    lanes = max(_round_up(G, 128), nc_pad)
    # Pad layer-0 input features up to H so h lands at a uniform lane offset
    # in the fused [x ; h] concat across all layers.
    in0_pad = max(_round_up(input_size, _ALIGN), H)
    layers = []
    row = 0
    for l in range(num_layer):
        in_pad = in0_pad if l == 0 else H
        w_rows = in_pad + H
        w_lo = row
        row += _round_up(w_rows, _ALIGN)
        b_lo = row
        row += _ALIGN
        layers.append(dict(in_pad=in_pad, w_rows=w_rows, w_lo=w_lo, b_lo=b_lo))
    lin_w_lo = row
    row += _round_up(H, _ALIGN)
    lin_b_lo = row
    row += _ALIGN
    return dict(H=H, G=G, lanes=lanes, nc_pad=nc_pad, in0_pad=in0_pad,
                layers=layers, lin_w_lo=lin_w_lo, lin_b_lo=lin_b_lo,
                total_rows=row, num_layer=num_layer, num_class=num_class,
                input_size=input_size)


def _lstm_head_kernel(lay, x_ref, slab_ref, out_ref):
    S, B, _ = x_ref.shape
    H = lay["H"]
    L = lay["num_layer"]
    lanes = lay["lanes"]

    # One packed slab -> static, tile-aligned row slices.  Loaded + cast to
    # f32 ONCE per call (bias broadcast also hoisted out of the recurrence).
    # At H=32 hoisting the weights into vregs is fine (~32 of 64 vregs for
    # 2 layers); for much larger H, read Ws inside the loop instead.
    Ws, Bs = [], []
    for l in range(L):
        m = lay["layers"][l]
        w = slab_ref[m["w_lo"]:m["w_lo"] + m["w_rows"], :].astype(jnp.float32)
        b = slab_ref[m["b_lo"]:m["b_lo"] + 1, :].astype(jnp.float32)
        Ws.append(w)                                      # (in_pad+H, lanes)
        Bs.append(jnp.broadcast_to(b, (B, lanes)))        # hoisted broadcast
    w_lin = slab_ref[lay["lin_w_lo"]:lay["lin_w_lo"] + H, :].astype(jnp.float32)
    b_lin = slab_ref[lay["lin_b_lo"]:lay["lin_b_lo"] + 1, :].astype(jnp.float32)

    def step(t, carry):
        hs, cs = carry
        inp = x_ref[t]                                    # (B, in0_pad)
        new_hs, new_cs = [], []
        for l in range(L):                                # small -> Python unroll
            # Fused input/hidden matmul: one MXU push per layer per step.
            xcat = jnp.concatenate([inp, hs[l]], axis=-1)  # (B, in_pad+H)
            gates = jnp.dot(xcat, Ws[l],
                            preferred_element_type=jnp.float32) + Bs[l]
            # Gate columns are packed [i, f, o, g]: sigmoid over one
            # contiguous 3H range, tanh over the last H only.
            sig = jax.nn.sigmoid(gates[:, 0:3 * H])
            i_g = sig[:, 0:H]
            f_g = sig[:, H:2 * H]
            o_g = sig[:, 2 * H:3 * H]
            g_g = jnp.tanh(gates[:, 3 * H:4 * H])
            c_new = f_g * cs[l] + i_g * g_g
            h_new = o_g * jnp.tanh(c_new)
            new_hs.append(h_new)
            new_cs.append(c_new)
            inp = h_new                                    # feeds next layer
        return tuple(new_hs), tuple(new_cs)

    zero = jnp.zeros((B, H), jnp.float32)
    init = (tuple(zero for _ in range(L)), tuple(zero for _ in range(L)))
    # Integer unroll for longer sequences keeps the body visible to the
    # LLO scheduler without exploding code size.
    hs, _ = lax.fori_loop(0, S, step, init, unroll=(True if S <= 8 else 8))

    # out[-1][-1]: top-layer hidden at the last timestep, last batch row.
    last = hs[L - 1][B - 1:B, :]                           # (1, H)
    fc = jnp.dot(last, w_lin, preferred_element_type=jnp.float32) + b_lin
    # Lane-dense, unmasked store: broadcast the single row across sublanes.
    out_ref[...] = jnp.broadcast_to(fc, out_ref.shape)


def model_forward(x, slab, *, input_size, hidden_size, num_layer, num_class):
    lay = _layout(input_size, hidden_size, num_layer, num_class)
    S, B, in_dim = x.shape
    # The module's out[-1][-1] + .view(input.size(0), num_class) is only
    # shape-valid for seq_len == 1; enforce it instead of silently reshaping.
    assert S == 1, "Model.forward's .view() is only valid for seq_len == 1"
    assert in_dim == input_size
    if in_dim < lay["in0_pad"]:
        x = jnp.pad(x, ((0, 0), (0, 0), (0, lay["in0_pad"] - in_dim)))
    x = x.astype(jnp.float32)

    kernel = functools.partial(_lstm_head_kernel, lay)
    vmem = pl.BlockSpec(memory_space=pltpu.MemorySpace.VMEM)
    out = pl.pallas_call(
        kernel,
        out_shape=jax.ShapeDtypeStruct((8, lay["lanes"]), jnp.float32),
        in_specs=[vmem, vmem],
        out_specs=vmem,
        compiler_params=pltpu.CompilerParams(
            vmem_limit_bytes=32 * 1024 * 1024),
    )(x, slab)

    # fc.view(batch_size, num_class) with batch_size = input.size(0) = S.
    return out[0, :num_class].reshape(S, num_class)


def init_params(key, input_size, hidden_size, num_layer, num_class):
    """Build the packed bf16 parameter slab + raw PyTorch-layout weights."""
    lay = _layout(input_size, hidden_size, num_layer, num_class)
    H = hidden_size
    G = 4 * H
    k = 1.0 / float(H) ** 0.5
    keys = jax.random.split(key, 4 * num_layer + 2)

    def u(kk, shape):
        # Round through bf16 so slab (bf16) and reference (f32) use
        # bit-identical parameter values.
        v = jax.random.uniform(kk, shape, jnp.float32, -k, k)
        return v.astype(jnp.bfloat16).astype(jnp.float32)

    def reorder(w):  # PyTorch gate order [i,f,g,o] -> kernel order [i,f,o,g]
        return jnp.concatenate([w[0:2 * H], w[3 * H:4 * H], w[2 * H:3 * H]],
                               axis=0)

    slab = jnp.zeros((lay["total_rows"], lay["lanes"]), jnp.float32)
    raw_layers = []
    idx = 0
    for l in range(num_layer):
        in_dim = input_size if l == 0 else H
        m = lay["layers"][l]
        w_ih = u(keys[idx], (G, in_dim)); idx += 1
        w_hh = u(keys[idx], (G, H)); idx += 1
        b_ih = u(keys[idx], (G,)); idx += 1
        b_hh = u(keys[idx], (G,)); idx += 1
        raw_layers.append((w_ih, w_hh, b_ih, b_hh))
        # Fused [W_ih^T ; W_hh^T] with gate columns reordered to [i,f,o,g];
        # bias folded b_ih + b_hh.  Rows beyond in_dim stay zero and match
        # the zero-padded input features.
        slab = slab.at[m["w_lo"]:m["w_lo"] + in_dim, 0:G].set(reorder(w_ih).T)
        hh_lo = m["w_lo"] + m["in_pad"]
        slab = slab.at[hh_lo:hh_lo + H, 0:G].set(reorder(w_hh).T)
        slab = slab.at[m["b_lo"], 0:G].set(reorder(b_ih + b_hh))
    w_lin = u(keys[idx], (num_class, H)); idx += 1
    b_lin = u(keys[idx], (num_class,))
    slab = slab.at[lay["lin_w_lo"]:lay["lin_w_lo"] + H,
                   0:num_class].set(w_lin.T)
    slab = slab.at[lay["lin_b_lo"], 0:num_class].set(b_lin)
    return {"slab": slab.astype(jnp.bfloat16),
            "raw": {"layers": raw_layers, "linear": (w_lin, b_lin)}}


def ref_forward(x, raw, *, hidden_size, num_layer, num_class):
    """Pure-JAX reference mirroring the PyTorch forward (gate order i,f,g,o)."""
    H = hidden_size
    S, B, _ = x.shape
    hs = [jnp.zeros((B, H), jnp.float32) for _ in range(num_layer)]
    cs = [jnp.zeros((B, H), jnp.float32) for _ in range(num_layer)]
    top = None
    for t in range(S):
        inp = x[t]
        for l in range(num_layer):
            w_ih, w_hh, b_ih, b_hh = raw["layers"][l]
            gates = inp @ w_ih.T + hs[l] @ w_hh.T + b_ih + b_hh
            i = jax.nn.sigmoid(gates[:, 0:H])
            f = jax.nn.sigmoid(gates[:, H:2 * H])
            g = jnp.tanh(gates[:, 2 * H:3 * H])
            o = jax.nn.sigmoid(gates[:, 3 * H:4 * H])
            cs[l] = f * cs[l] + i * g
            hs[l] = o * jnp.tanh(cs[l])
            inp = hs[l]
        top = inp
    last = top[B - 1]                      # out[-1][-1]
    w_lin, b_lin = raw["linear"]
    fc = last @ w_lin.T + b_lin
    return fc.reshape(S, num_class)


if __name__ == "__main__":
    input_size, hidden_size, num_layer, num_class = 16, 32, 2, 8
    S, B = 1, 4  # seq_len must be 1 for the .view() in the reference forward

    key = jax.random.PRNGKey(0)
    kx, kp = jax.random.split(key)
    x = jax.random.normal(kx, (S, B, input_size), dtype=jnp.float32)
    params = init_params(kp, input_size, hidden_size, num_layer, num_class)

    out = model_forward(x, params["slab"], input_size=input_size,
                        hidden_size=hidden_size, num_layer=num_layer,
                        num_class=num_class)
    out = jax.block_until_ready(out)

    ref = ref_forward(x, params["raw"], hidden_size=hidden_size,
                      num_layer=num_layer, num_class=num_class)
    assert out.shape == (S, num_class)
    assert jnp.allclose(out, ref, atol=1e-4, rtol=1e-4), (
        float(jnp.max(jnp.abs(out - ref))))
    print("KERNEL_OK")
</pallas_src>

<mosaic_0001>
module attributes {stable_mosaic.version = 11 : i64} {
  func.func @_lstm_head_kernel(%arg0: memref<1x4x32xf32, #tpu.memory_space<vmem>>, %arg1: memref<208x128xbf16, #tpu.memory_space<vmem>>, %arg2: memref<8x128xf32, #tpu.memory_space<vmem>>) attributes {dimension_semantics = [], scalar_prefetch = 0 : i64, scratch_operands = 0 : i64, tpu.core_type = #tpu.core_type<tc>} {
    %c0 = arith.constant 0 : index
    %c0_0 = arith.constant 0 : index
    %0 = vector.load %arg1[%c0, %c0_0] : memref<208x128xbf16, #tpu.memory_space<vmem>>, vector<64x128xbf16>
    %1 = arith.extf %0 : vector<64x128xbf16> to vector<64x128xf32>
    %c64 = arith.constant 64 : index
    %c0_1 = arith.constant 0 : index
    %2 = vector.load %arg1[%c64, %c0_1] : memref<208x128xbf16, #tpu.memory_space<vmem>>, vector<1x128xbf16>
    %3 = arith.extf %2 : vector<1x128xbf16> to vector<1x128xf32>
    %4 = vector.shape_cast %3 : vector<1x128xf32> to vector<1x128xf32>
    %5 = vector.broadcast %4 : vector<1x128xf32> to vector<4x128xf32>
    %c80 = arith.constant 80 : index
    %c0_2 = arith.constant 0 : index
    %6 = vector.load %arg1[%c80, %c0_2] : memref<208x128xbf16, #tpu.memory_space<vmem>>, vector<64x128xbf16>
    %7 = arith.extf %6 : vector<64x128xbf16> to vector<64x128xf32>
    %c144 = arith.constant 144 : index
    %c0_3 = arith.constant 0 : index
    %8 = vector.load %arg1[%c144, %c0_3] : memref<208x128xbf16, #tpu.memory_space<vmem>>, vector<1x128xbf16>
    %9 = arith.extf %8 : vector<1x128xbf16> to vector<1x128xf32>
    %10 = vector.shape_cast %9 : vector<1x128xf32> to vector<1x128xf32>
    %11 = vector.broadcast %10 : vector<1x128xf32> to vector<4x128xf32>
    %c160 = arith.constant 160 : index
    %c0_4 = arith.constant 0 : index
    %12 = vector.load %arg1[%c160, %c0_4] : memref<208x128xbf16, #tpu.memory_space<vmem>>, vector<32x128xbf16>
    %13 = arith.extf %12 : vector<32x128xbf16> to vector<32x128xf32>
    %c192 = arith.constant 192 : index
    %c0_5 = arith.constant 0 : index
    %14 = vector.load %arg1[%c192, %c0_5] : memref<208x128xbf16, #tpu.memory_space<vmem>>, vector<1x128xbf16>
    %15 = arith.extf %14 : vector<1x128xbf16> to vector<1x128xf32>
    %cst = arith.constant 0.000000e+00 : f32
    %16 = vector.broadcast %cst : f32 to vector<4x32xf32>
    %c0_i32 = arith.constant 0 : i32
    %17 = arith.index_cast %c0_i32 : i32 to index
    %c0_6 = arith.constant 0 : index
    %c0_7 = arith.constant 0 : index
    %18 = vector.load %arg0[%17, %c0_6, %c0_7] : memref<1x4x32xf32, #tpu.memory_space<vmem>>, vector<1x4x32xf32>
    %19 = vector.shape_cast %18 : vector<1x4x32xf32> to vector<4x32xf32>
    %20 = tpu.concatenate %19, %16 in 1 : vector<4x32xf32>, vector<4x32xf32> -> vector<4x64xf32>
    %cst_8 = arith.constant dense<0.000000e+00> : vector<4x128xf32>
    %21 = tpu.matmul %20, %1, %cst_8 {dimension_numbers = #tpu.dot_dimension_numbers<[1], [0], [0], [1], [0, 0, 1, 1], [], []>} : vector<4x64xf32>, vector<64x128xf32>, vector<4x128xf32> -> vector<4x128xf32>
    %22 = arith.addf %21, %5 : vector<4x128xf32>
    %23 = vector.extract_strided_slice %22 {offsets = [0, 0], sizes = [4, 96], strides = [1, 1]} : vector<4x128xf32> to vector<4x96xf32>
    %24 = arith.negf %23 : vector<4x96xf32>
    %25 = math.exp %24 : vector<4x96xf32>
    %cst_9 = arith.constant 1.000000e+00 : f32
    %26 = vector.broadcast %cst_9 : f32 to vector<4x96xf32>
    %27 = arith.addf %26, %25 : vector<4x96xf32>
    %28 = arith.divf %26, %27 : vector<4x96xf32>
    %29 = vector.extract_strided_slice %28 {offsets = [0, 0], sizes = [4, 32], strides = [1, 1]} : vector<4x96xf32> to vector<4x32xf32>
    %30 = vector.extract_strided_slice %28 {offsets = [0, 32], sizes = [4, 32], strides = [1, 1]} : vector<4x96xf32> to vector<4x32xf32>
    %31 = vector.extract_strided_slice %28 {offsets = [0, 64], sizes = [4, 32], strides = [1, 1]} : vector<4x96xf32> to vector<4x32xf32>
    %32 = vector.extract_strided_slice %22 {offsets = [0, 96], sizes = [4, 32], strides = [1, 1]} : vector<4x128xf32> to vector<4x32xf32>
    %33 = math.tanh %32 : vector<4x32xf32>
    %34 = arith.mulf %30, %16 : vector<4x32xf32>
    %35 = arith.mulf %29, %33 : vector<4x32xf32>
    %36 = arith.addf %34, %35 : vector<4x32xf32>
    %37 = math.tanh %36 : vector<4x32xf32>
    %38 = arith.mulf %31, %37 : vector<4x32xf32>
    %39 = tpu.concatenate %38, %16 in 1 : vector<4x32xf32>, vector<4x32xf32> -> vector<4x64xf32>
    %cst_10 = arith.constant dense<0.000000e+00> : vector<4x128xf32>
    %40 = tpu.matmul %39, %7, %cst_10 {dimension_numbers = #tpu.dot_dimension_numbers<[1], [0], [0], [1], [0, 0, 1, 1], [], []>} : vector<4x64xf32>, vector<64x128xf32>, vector<4x128xf32> -> vector<4x128xf32>
    %41 = arith.addf %40, %11 : vector<4x128xf32>
    %42 = vector.extract_strided_slice %41 {offsets = [0, 0], sizes = [4, 96], strides = [1, 1]} : vector<4x128xf32> to vector<4x96xf32>
    %43 = arith.negf %42 : vector<4x96xf32>
    %44 = math.exp %43 : vector<4x96xf32>
    %cst_11 = arith.constant 1.000000e+00 : f32
    %45 = vector.broadcast %cst_11 : f32 to vector<4x96xf32>
    %46 = arith.addf %45, %44 : vector<4x96xf32>
    %47 = arith.divf %45, %46 : vector<4x96xf32>
    %48 = vector.extract_strided_slice %47 {offsets = [0, 0], sizes = [4, 32], strides = [1, 1]} : vector<4x96xf32> to vector<4x32xf32>
    %49 = vector.extract_strided_slice %47 {offsets = [0, 32], sizes = [4, 32], strides = [1, 1]} : vector<4x96xf32> to vector<4x32xf32>
    %50 = vector.extract_strided_slice %47 {offsets = [0, 64], sizes = [4, 32], strides = [1, 1]} : vector<4x96xf32> to vector<4x32xf32>
    %51 = vector.extract_strided_slice %41 {offsets = [0, 96], sizes = [4, 32], strides = [1, 1]} : vector<4x128xf32> to vector<4x32xf32>
    %52 = math.tanh %51 : vector<4x32xf32>
    %53 = arith.mulf %49, %16 : vector<4x32xf32>
    %54 = arith.mulf %48, %52 : vector<4x32xf32>
    %55 = arith.addf %53, %54 : vector<4x32xf32>
    %56 = math.tanh %55 : vector<4x32xf32>
    %57 = arith.mulf %50, %56 : vector<4x32xf32>
    %c1_i32 = arith.constant 1 : i32
    %58 = vector.extract_strided_slice %57 {offsets = [3, 0], sizes = [1, 32], strides = [1, 1]} : vector<4x32xf32> to vector<1x32xf32>
    %cst_12 = arith.constant dense<0.000000e+00> : vector<1x128xf32>
    %59 = tpu.matmul %58, %13, %cst_12 {dimension_numbers = #tpu.dot_dimension_numbers<[1], [0], [0], [1], [0, 0, 1, 1], [], []>} : vector<1x32xf32>, vector<32x128xf32>, vector<1x128xf32> -> vector<1x128xf32>
    %60 = arith.addf %59, %15 : vector<1x128xf32>
    %61 = vector.shape_cast %60 : vector<1x128xf32> to vector<1x128xf32>
    %62 = vector.broadcast %61 : vector<1x128xf32> to vector<8x128xf32>
    %c0_13 = arith.constant 0 : index
    %c0_14 = arith.constant 0 : index
    %63 = vector.load %arg2[%c0_13, %c0_14] : memref<8x128xf32, #tpu.memory_space<vmem>>, vector<8x128xf32>
    tpu.vector_store %arg2[%c0_13, %c0_14], %62 {strides = array<i32>} : memref<8x128xf32, #tpu.memory_space<vmem>>, vector<8x128xf32>,
    return
  }
}

</mosaic_0001>

<bundles_post_ra>
// kernel: tpu_custom_call.1
= control target key start
LH: loop header
LB: loop body
LE: loop exit
PB: predicated region body
PF: predicated region fallthrough
CT: control target
= control target key end

     0   :  { %7 = vsyncpa [#allocation3], 0  ;;  %s745_s0 = inlined_call_operand.hbm [shape: f32[1,4,32], index: 0, kind: input, shape index: {}]   ;;  %s746_s1 = inlined_call_operand.hbm [shape: bf16[208,128], index: 1, kind: input, shape index: {}]   ;;  %s747_s2 = inlined_call_operand.hbm [shape: f32[8,128], index: 2, kind: output, shape index: {}]  }
   0x1   :  { %8 = vsyncpa [#allocation6], 0 }
   0x2   :  { %9 = vsyncpa [#allocation4], 0  ;;  %s645_s9 = smov [#allocation2]   ;;  %s646_s11 = smov [#allocation5]  }
   0x3   :  { %s16_s10 = sshll.u32 %s645_s9, 4  ;;  %s25_s12 = sshll.u32 %s646_s11, 4  ;;  %s17_s10 = int_to_ptr.vmem [resolvable:$true] %s16_s10  ;;  %s669_s12 = int_to_ptr.vmem [resolvable:$true] %s25_s12 }
   0x4   :  { %s573_s15 = scalar_lea.hbm %s745_s0, 64 }
   0x5   :  { %p574_p0 = scmp.ne.s32.totalorder %s745_s0, %s573_s15  ;;  %p577_p1 = scmp.lt.u32.totalorder %s573_s15, %s745_s0 }
   0x7   :  { %p579_p2 = pnand %p577_p1, %p574_p0 }
   0x9   :  { %582 = shalt.err (!%p579_p2)
}
   0xa   :  { %s583_s20 = scalar_lea.vmem %s17_s10, 64  ;;  %p588_p4 = scmp.lt.s32.totalorder %s17_s10, %s17_s10 }
   0xb   :  { %p584_p3 = scmp.ne.s32.totalorder %s17_s10, %s583_s20  ;;  %p589_p5 = scmp.lt.s32.totalorder %s583_s20, %s583_s20 }
   0xd   :  { %p590_p6 = por %p589_p5, %p588_p4 }
   0xf   :  { %p591_p7 = pnand %p590_p6, %p584_p3 }
  0x11   :  { %594 = shalt.err (!%p591_p7)
}
  0x12   :  { %19 = dma.hbm_to_vmem [thread:$0]  %s745_s0, 64, %s17_s10, [#allocation3]  }
  0x13   :  { %s595_s25 = scalar_lea.hbm %s746_s1, 1664 }
  0x14   :  { %p596_p8 = scmp.ne.s32.totalorder %s746_s1, %s595_s25  ;;  %p599_p9 = scmp.lt.u32.totalorder %s595_s25, %s746_s1 }
  0x16   :  { %p601_p10 = pnand %p599_p9, %p596_p8 }
  0x18   :  { %604 = shalt.err (!%p601_p10)
}
  0x19   :  { %s605_s30 = scalar_lea.vmem %s669_s12, 1664  ;;  %p610_p12 = scmp.lt.s32.totalorder %s669_s12, %s669_s12 }
  0x1a   :  { %p606_p11 = scmp.ne.s32.totalorder %s669_s12, %s605_s30  ;;  %p611_p13 = scmp.lt.s32.totalorder %s605_s30, %s605_s30 }
  0x1c   :  { %p612_p0 = por %p611_p13, %p610_p12 }
  0x1e   :  { %p613_p1 = pnand %p612_p0, %p606_p11 }
  0x20   :  { %616 = shalt.err (!%p613_p1)
}
  0x21   :  { %s647_s0 = smov 64   ;;  %s648_s3 = smov 4  }
  0x22   :  { %31 = dma.hbm_to_vmem [thread:$0]  %s746_s1, 1664, %s669_s12, [#allocation6], %s647_s0, %s647_s0, %s648_s3  }
  0x23   :  { %639 = dma.done.wait [#allocation3], 64  }
  0x24   :  { %640 = vsyncadd [#allocation3], 4294967232 }
  0x25   :  { %641 = dma.done.wait [#allocation6], 1664  }
  0x26   :  { %642 = vsyncadd [#allocation6], 4294965632  ;;  %v649_v0 = vmov 0.0|0.0   ;;  %vm650_vm0 = vmmov 0   ;;  %v651_v1 = vmov 0.0   ;;  %v398_v2 = vld [vmem:[#allocation5] sm:$0xff]   ;;  %v56_v8 = vlaneseq }
  0x27   :  { %518 = vmatprep.subr.bf16.mxu0 %v649_v0  ;;  %485 = vmatprep.mubr.msk.f32.mxu0 %vm650_vm0, %v651_v1  ;;  %v437_v3 = vld [vmem:[#allocation5 + $0x8] sm:$0xff]   ;;  %v438_v4 = vld [vmem:[#allocation5 + $0x10] sm:$0xff]   ;;  %v439_v5 = vld [vmem:[#allocation5 + $0x18] sm:$0xff]   ;;  %vm93_vm1 = vcmask 261120   ;;  %vm95_vm2 = vcmask 523264   ;;  %s652_s1 = smov 32  }
  0x28   :  { %530 = vmatprep.subr.bf16.mxu1 %v649_v0  ;;  %504 = vmatprep.mubr.msk.f32.mxu1 %vm650_vm0, %v651_v1  ;;  %v92_v6 = vld [vmem:[#allocation2] sm:$0xf]  ;;  %v57_v9 = vshrl.u32 %v56_v8, 7  ;;  %v54_v10 = vld [vmem:[#allocation5 + $0x20] sm:$0x1]  ;;  %v440_v27 = vld [vmem:[#allocation5 + $0x28] sm:$0xff]  }
  0x29   :  { %520 = vmatpush3.bf16.msra.mxu0 %v398_v2  ;;  %v94_v7 = vsel %vm93_vm1, %v92_v6, 0.0  ;;  %v55_v11 = vunpack.c.l.bf16 %v54_v10  ;;  %532 = vmatpush3.bf16.msra.mxu1 %v440_v27  ;;  %v441_v28 = vld [vmem:[#allocation5 + $0x30] sm:$0xff]   ;;  %v442_v29 = vld [vmem:[#allocation5 + $0x38] sm:$0xff]   ;;  %v443_v31 = vld [vmem:[#allocation5 + $0x40] sm:$0xff]   ;;  %s653_s6 = smov [#allocation7]  }
  0x2a   :  { %521 = vmatprep.subr.bf16.mxu0 %v649_v0  ;;  %v713_v12 = vsub.s32 0, %v57_v9  ;;  %533 = vmatprep.subr.bf16.mxu1 %v649_v0  ;;  %v76_v36 = vld [vmem:[#allocation5 + $0x48] sm:$0x1]  ;;  %v444_v52 = vld [vmem:[#allocation5 + $0x50] sm:$0xff]   ;;  %v445_v53 = vld [vmem:[#allocation5 + $0x58] sm:$0xff]   ;;  %s382_s7 = sshll.u32 %s653_s6, 4  ;;  %s383_s7 = int_to_ptr.vmem [resolvable:$true] %s382_s7 }
  0x2b   :  { %v77_v37 = vunpack.c.l.bf16 %v76_v36  ;;  %v90_v59 = vld [vmem:[#allocation5 + $0x60] sm:$0x1]  ;;  %s617_s8 = scalar_lea.vmem %s383_s7, 128  ;;  %p622_p3 = scmp.lt.s32.totalorder %s383_s7, %s383_s7 }
  0x2c   :  { %v59_v13 = vrot.slane %v55_v11, %v713_v12  ;;  %v91_v60 = vunpack.c.l.bf16 %v90_v59  ;;  %p618_p2 = scmp.ne.s32.totalorder %s383_s7, %s617_s8  ;;  %p623_p4 = scmp.lt.s32.totalorder %s617_s8, %s617_s8 }
  0x2d   :  { %523 = vmatpush3.bf16.msra.mxu0 %v437_v3  ;;  %535 = vmatpush3.bf16.msra.mxu1 %v441_v28  ;;  %v81_v38 = vrot.slane %v77_v37, %v713_v12 }
  0x2e   :  { %524 = vmatprep.subr.bf16.mxu0 %v649_v0  ;;  %536 = vmatprep.subr.bf16.mxu1 %v649_v0  ;;  %p624_p5 = por %p623_p4, %p622_p3 }
  0x30   :  { %p625_p6 = pnand %p624_p5, %p618_p2 }
  0x31   :  { %526 = vmatpush3.bf16.msra.mxu0 %v438_v4  ;;  %538 = vmatpush3.bf16.msra.mxu1 %v442_v29 }
  0x32   :  { %527 = vmatprep.subr.bf16.mxu0 %v649_v0  ;;  %539 = vmatprep.subr.bf16.mxu1 %v649_v0 }
  0x35   :  { %529 = vmatpush3.bf16.msra.mxu0 %v439_v5  ;;  %541 = vmatpush3.bf16.msra.mxu1 %v443_v31 }
  0x36   :  { %542 = vmatprep.subr.bf16.mxu0 %v649_v0 }
  0x38   :  { %486 = vmatmul.mubr.msk.f32.vlgmr.msra.gmra.mrb[0].mxu0 %vm95_vm2, %v94_v7 }
  0x39   :  { %515 = vmatprep.mubr.msk.f32.mxu0 %vm650_vm0, %v651_v1  ;;  %544 = vmatpush3.bf16.msra.mxu0 %v444_v52 }
  0x3a   :  { %545 = vmatprep.subr.bf16.mxu0 %v649_v0 }
  0x3d   :  { %547 = vmatpush3.bf16.msra.mxu0 %v445_v53 }
 0x10b   :  { %v165_v14 = vpop.f32.mrb[0].mxu0 }
 0x10c   :  { %v166_v15 = vadd.f32 %v165_v14, %v59_v13  ;;  %v487_v16 = vpop.f32.mrb[1].mxu0 }
 0x10e   :  { %557 = vtanh.f32 %v166_v15  ;;  %v393_v18 = vmul.f32 -1.442695, %v166_v15 }
 0x110   :  { %559 = vpow2.f32 %v393_v18 }
 0x118   :  { %v558_v17 = vpop.eup %557 }
 0x119   :  { %178 = vrot.lane.b32.xlu0 %v558_v17, %s652_s1 }
 0x11a   :  { %v560_v19 = vpop.eup %559 }
 0x11b   :  { %v172_v20 = vadd.f32 1.0, %v560_v19 }
 0x11d   :  { %561 = vrcp.f32 %v172_v20 }
 0x127   :  { %v562_v21 = vpop.eup %561 }
 0x128   :  { %v176_v24 = vmul.f32 0.0, %v562_v21 }
 0x18b   :  { %v179_v22 = vpop.permute.xlu0 %178 }
 0x18c   :  { %v181_v23 = vmul.f32 %v562_v21, %v179_v22 }
 0x18e   :  { %183 = vrot.lane.b32.xlu0 %v181_v23, %s652_s1 }
 0x200   :  { %v184_v25 = vpop.permute.xlu0 %183 }
 0x201   :  { %v186_v26 = vadd.f32 %v184_v25, %v176_v24 }
 0x203   :  { %563 = vtanh.f32 %v186_v26 }
 0x20d   :  { %v564_v30 = vpop.eup %563 }
 0x20e   :  { %189 = vrot.lane.b32.xlu1 %v564_v30, %s652_s1 }
 0x280   :  { %v190_v32 = vpop.permute.xlu1 %189 }
 0x281   :  { %v192_v33 = vmul.f32 %v562_v21, %v190_v32 }
 0x283   :  { %194 = vrot.lane.b32.xlu1 %v192_v33, %s647_s0 }
 0x2f5   :  { %v195_v34 = vpop.permute.xlu1 %194 }
 0x2f6   :  { %v197_v35 = vsel %vm93_vm1, %v195_v34, 0.0 }
 0x2f7   :  { %505 = vmatmul.mubr.msk.f32.vlgmr.msra.gmra.mrb[0].mxu1 %vm95_vm2, %v197_v35 }
 0x3ca   :  { %v267_v39 = vpop.f32.mrb[0].mxu1 }
 0x3cb   :  { %v268_v40 = vadd.f32 %v267_v39, %v81_v38  ;;  %v506_v41 = vpop.f32.mrb[1].mxu1 }
 0x3cd   :  { %565 = vtanh.f32 %v268_v40  ;;  %v395_v43 = vmul.f32 -1.442695, %v268_v40 }
 0x3cf   :  { %567 = vpow2.f32 %v395_v43 }
 0x3d7   :  { %v566_v42 = vpop.eup %565 }
 0x3d8   :  { %280 = vrot.lane.b32.xlu0 %v566_v42, %s652_s1 }
 0x3d9   :  { %v568_v44 = vpop.eup %567 }
 0x3da   :  { %v274_v45 = vadd.f32 1.0, %v568_v44 }
 0x3dc   :  { %569 = vrcp.f32 %v274_v45 }
 0x3e6   :  { %v570_v46 = vpop.eup %569 }
 0x3e7   :  { %v278_v49 = vmul.f32 0.0, %v570_v46 }
 0x44a   :  { %v281_v47 = vpop.permute.xlu0 %280 }
 0x44b   :  { %v283_v48 = vmul.f32 %v570_v46, %v281_v47 }
 0x44d   :  { %285 = vrot.lane.b32.xlu1 %v283_v48, %s652_s1 }
 0x4bf   :  { %v286_v50 = vpop.permute.xlu1 %285 }
 0x4c0   :  { %v288_v51 = vadd.f32 %v286_v50, %v278_v49 }
 0x4c2   :  { %571 = vtanh.f32 %v288_v51 }
 0x4cc   :  { %v572_v54 = vpop.eup %571 }
 0x4cd   :  { %291 = vrot.lane.b32.xlu0 %v572_v54, %s652_s1 }
 0x53f   :  { %v292_v55 = vpop.permute.xlu0 %291 }
 0x540   :  { %v294_v56 = vmul.f32 %v570_v46, %v292_v55 }
 0x542   :  { %v296_v57 = vrot.slane %v294_v56, 3 }
 0x544   :  { %297 = vrot.lane.b32.xlu1 %v296_v57, %s647_s0 }
 0x5b6   :  { %v298_v58 = vpop.permute.xlu1 %297 }
 0x5b7   :  { %516 = vmatmul.mubr.msk.f32.vlgmr.msra.gmra.mrb[2].mxu0 %vm93_vm1, %v298_v58 }
 0x68a   :  { %v367_v61 = vpop.f32.mrb[2].mxu0 }
 0x68b   :  { %v368_v62 = vadd.f32 %v367_v61, %v91_v60  ;;  %v517_v63 = vpop.f32.mrb[3].mxu0 }
 0x68d   :  { %v374_v0 = vrot.slane %v368_v62, %v713_v12 }
 0x68f   :  { %375 = vst [vmem:[#allocation7] sm:$0xff] %v374_v0 }
 0x690   :  { %628 = shalt.err (!%p625_p6)
}
 0x691   :  { %s629_s11 = scalar_lea.hbm %s747_s2, 128 }
 0x692   :  { %p630_p7 = scmp.ne.s32.totalorder %s747_s2, %s629_s11  ;;  %p633_p8 = scmp.lt.u32.totalorder %s629_s11, %s747_s2 }
 0x694   :  { %p635_p9 = pnand %p633_p8, %p630_p7 }
 0x696   :  { %638 = shalt.err (!%p635_p9)
}
 0x697   :  { %385 = dma.vmem_to_hbm [thread:$0]  %s383_s7, 128, %s747_s2, [#allocation4]  }
 0x698   :  { %643 = dma.done.wait [#allocation4], 128  }
 0x699   :  { %644 = vsyncadd [#allocation4], 4294967168 }
 0x69a   :  { %389 = vsyncpa [#allocation3], 1 }
 0x69b   :  { %390 = vsyncpa [#allocation6], 1 }
 0x69c   :  { %391 = vsyncpa [#allocation4], 1 }

</bundles_post_ra>
